<compile_context>
chip_gen: v5e
topology: v5e:2x2
jax: 0.10.0
libtpu: 0.0.40
codegen_flags: <defaults>
</compile_context>

<pallas_src>
import jax
import jax.numpy as jnp
from jax import lax
from jax.experimental import pallas as pl
from jax.experimental.pallas import tpu as pltpu

# Full unroll + full-extent VMEM blocks are only sensible for short static sequences.
_MAX_UNROLL_SEQ = 256


def rnn_kernel(x_ref, h0_ref, wih_ref, whh_ref, out_ref):
    """Whole sequence in one invocation. Everything lives in VMEM / vregs.

    x_ref   : (seq, input_size + 1)     -- last column is ones (bias column)
    h0_ref  : (1, hidden)
    wih_ref : (hidden, input_size + 1)  -- last column is b_ih + b_hh (fused bias)
    whh_ref : (hidden, hidden)          -- untransposed W_hh
    out_ref : (seq, hidden)
    """
    seq = out_ref.shape[0]

    # Phase 1: batched input projection for ALL timesteps, bias included via the
    # ones/bias column. Contract the last dim of both operands (== x @ W_ih^T + b).
    xw = lax.dot_general(
        x_ref[...],
        wih_ref[...],
        dimension_numbers=(((1,), (1,)), ((), ())),
        preferred_element_type=jnp.float32,
    )  # (seq, hidden), vreg-resident

    whh = whh_ref[...]  # keep the recurrent weight in vregs across the loop

    # Phase 2: serial recurrence with static Python indices. Only a tiny
    # (1,H)x(H,H) matmul + add + tanh per step sits on the critical chain.
    h = h0_ref[...]  # (1, hidden)
    rows = []
    for t in range(seq):
        pre = xw[t : t + 1, :] + lax.dot_general(
            h,
            whh,
            dimension_numbers=(((1,), (1,)), ((), ())),  # h @ W_hh^T
            preferred_element_type=jnp.float32,
        )
        h = jnp.tanh(pre)
        rows.append(h)

    # Single consolidated writeback (XLU sublane concat, then one store).
    out_ref[...] = jnp.concatenate(rows, axis=0).astype(out_ref.dtype)


def prepare_params(w_ih, w_hh, b_ih, b_hh):
    """One-time parameter prep (call OUTSIDE jit): fold the fused bias into W_ih.

    Returns (w_ih_aug, w_hh_f32) where w_ih_aug has shape (hidden, input_size + 1)
    and its last column equals b_ih + b_hh.
    """
    w_ih_aug = jnp.concatenate(
        [w_ih.astype(jnp.float32), (b_ih + b_hh).astype(jnp.float32)[:, None]], axis=1
    )
    return w_ih_aug, w_hh.astype(jnp.float32)


@jax.jit
def rnn_forward(x, hidden, w_ih_aug, w_hh):
    """Pallas implementation of RNNModel.forward.

    x:        (seq, input_size)               float32
    hidden:   (num_layers=1, 1, hidden)       float32
    w_ih_aug: (hidden, input_size + 1)        from prepare_params (bias folded in)
    w_hh:     (hidden, hidden)
    Returns (out, h_n) with shapes (1, seq, hidden), (1, 1, hidden).
    """
    seq, _ = x.shape
    hidden_size = w_hh.shape[0]
    assert seq <= _MAX_UNROLL_SEQ, "full-unroll kernel is for short static sequences"

    # Ones column activates the fused-bias column of w_ih_aug in the projection matmul.
    x_aug = jnp.concatenate(
        [x.astype(jnp.float32), jnp.ones((seq, 1), jnp.float32)], axis=1
    )
    h0 = hidden.reshape(1, hidden_size).astype(jnp.float32)

    vmem = pl.BlockSpec(memory_space=pltpu.MemorySpace.VMEM)

    out2d = pl.pallas_call(
        rnn_kernel,
        out_shape=jax.ShapeDtypeStruct((seq, hidden_size), jnp.float32),
        in_specs=[vmem, vmem, vmem, vmem],
        out_specs=vmem,
    )(x_aug, h0, w_ih_aug, w_hh)

    out = out2d[None, :, :]            # (1, seq, hidden)  -- batch dim from x.unsqueeze(0)
    h_n = out2d[-1:, :][None, :, :]    # (num_layers=1, 1, hidden) -- last step == h_n
    return out, h_n


def rnn_reference(x, hidden, w_ih, w_hh, b_ih, b_hh):
    """Pure-JAX reference matching torch.nn.RNN (tanh, 1 layer, batch=1)."""
    h = hidden[0, 0]  # (hidden,)

    def step(h, x_t):
        h_new = jnp.tanh(x_t @ w_ih.T + b_ih + h @ w_hh.T + b_hh)
        return h_new, h_new

    h_last, outs = jax.lax.scan(step, h, x)
    return outs[None, :, :], h_last[None, None, :]


if __name__ == "__main__":
    # Small shapes consistent with the module: seq=8, input_size=8, hidden=32, num_layers=1.
    input_size = 8
    hidden_size = 32
    seq_len = 8

    key = jax.random.PRNGKey(0)
    kx, kwih, kwhh, kbih, kbhh = jax.random.split(key, 5)

    # PyTorch nn.RNN default init is U(-1/sqrt(H), 1/sqrt(H)).
    bound = 1.0 / jnp.sqrt(jnp.float32(hidden_size))
    w_ih = jax.random.uniform(kwih, (hidden_size, input_size), jnp.float32, -bound, bound)
    w_hh = jax.random.uniform(kwhh, (hidden_size, hidden_size), jnp.float32, -bound, bound)
    b_ih = jax.random.uniform(kbih, (hidden_size,), jnp.float32, -bound, bound)
    b_hh = jax.random.uniform(kbhh, (hidden_size,), jnp.float32, -bound, bound)

    # forward() input: x of shape (seq, input_size); hidden from init_hidden(): zeros.
    x = jax.random.normal(kx, (seq_len, input_size), jnp.float32)
    hidden0 = jnp.zeros((1, 1, hidden_size), jnp.float32)

    # One-time parameter prep (bias folded into W_ih) outside the jitted forward.
    w_ih_aug, w_hh_f32 = prepare_params(w_ih, w_hh, b_ih, b_hh)

    out, h_n = rnn_forward(x, hidden0, w_ih_aug, w_hh_f32)
    out = jax.block_until_ready(out)
    h_n = jax.block_until_ready(h_n)

    # Correctness check against pure-JAX reference of torch.nn.RNN semantics.
    out_ref, h_ref = rnn_reference(x, hidden0, w_ih, w_hh, b_ih, b_hh)
    assert out.shape == (1, seq_len, hidden_size)
    assert h_n.shape == (1, 1, hidden_size)
    assert jnp.allclose(out, out_ref, atol=1e-5, rtol=1e-5)
    assert jnp.allclose(h_n, h_ref, atol=1e-5, rtol=1e-5)

    print("KERNEL_OK")
</pallas_src>

<mosaic_0001>
module attributes {stable_mosaic.version = 11 : i64} {
  func.func @rnn_kernel(%arg0: memref<8x9xf32, #tpu.memory_space<vmem>>, %arg1: memref<1x32xf32, #tpu.memory_space<vmem>>, %arg2: memref<32x9xf32, #tpu.memory_space<vmem>>, %arg3: memref<32x32xf32, #tpu.memory_space<vmem>>, %arg4: memref<8x32xf32, #tpu.memory_space<vmem>>) attributes {dimension_semantics = [], scalar_prefetch = 0 : i64, scratch_operands = 0 : i64, tpu.core_type = #tpu.core_type<tc>} {
    %c0 = arith.constant 0 : index
    %c0_0 = arith.constant 0 : index
    %0 = vector.load %arg0[%c0, %c0_0] : memref<8x9xf32, #tpu.memory_space<vmem>>, vector<8x9xf32>
    %c0_1 = arith.constant 0 : index
    %c0_2 = arith.constant 0 : index
    %1 = vector.load %arg2[%c0_1, %c0_2] : memref<32x9xf32, #tpu.memory_space<vmem>>, vector<32x9xf32>
    %cst = arith.constant dense<0.000000e+00> : vector<8x32xf32>
    %2 = tpu.matmul %0, %1, %cst {dimension_numbers = #tpu.dot_dimension_numbers<[1], [1], [0], [0], [0, 0, 1, 0], [], []>} : vector<8x9xf32>, vector<32x9xf32>, vector<8x32xf32> -> vector<8x32xf32>
    %c0_3 = arith.constant 0 : index
    %c0_4 = arith.constant 0 : index
    %3 = vector.load %arg3[%c0_3, %c0_4] : memref<32x32xf32, #tpu.memory_space<vmem>>, vector<32x32xf32>
    %c0_5 = arith.constant 0 : index
    %c0_6 = arith.constant 0 : index
    %4 = vector.load %arg1[%c0_5, %c0_6] : memref<1x32xf32, #tpu.memory_space<vmem>>, vector<1x32xf32>
    %5 = vector.extract_strided_slice %2 {offsets = [0, 0], sizes = [1, 32], strides = [1, 1]} : vector<8x32xf32> to vector<1x32xf32>
    %cst_7 = arith.constant dense<0.000000e+00> : vector<1x32xf32>
    %6 = tpu.matmul %4, %3, %cst_7 {dimension_numbers = #tpu.dot_dimension_numbers<[1], [1], [0], [0], [0, 0, 1, 0], [], []>} : vector<1x32xf32>, vector<32x32xf32>, vector<1x32xf32> -> vector<1x32xf32>
    %7 = arith.addf %5, %6 : vector<1x32xf32>
    %8 = math.tanh %7 : vector<1x32xf32>
    %9 = vector.extract_strided_slice %2 {offsets = [1, 0], sizes = [1, 32], strides = [1, 1]} : vector<8x32xf32> to vector<1x32xf32>
    %cst_8 = arith.constant dense<0.000000e+00> : vector<1x32xf32>
    %10 = tpu.matmul %8, %3, %cst_8 {dimension_numbers = #tpu.dot_dimension_numbers<[1], [1], [0], [0], [0, 0, 1, 0], [], []>} : vector<1x32xf32>, vector<32x32xf32>, vector<1x32xf32> -> vector<1x32xf32>
    %11 = arith.addf %9, %10 : vector<1x32xf32>
    %12 = math.tanh %11 : vector<1x32xf32>
    %13 = vector.extract_strided_slice %2 {offsets = [2, 0], sizes = [1, 32], strides = [1, 1]} : vector<8x32xf32> to vector<1x32xf32>
    %cst_9 = arith.constant dense<0.000000e+00> : vector<1x32xf32>
    %14 = tpu.matmul %12, %3, %cst_9 {dimension_numbers = #tpu.dot_dimension_numbers<[1], [1], [0], [0], [0, 0, 1, 0], [], []>} : vector<1x32xf32>, vector<32x32xf32>, vector<1x32xf32> -> vector<1x32xf32>
    %15 = arith.addf %13, %14 : vector<1x32xf32>
    %16 = math.tanh %15 : vector<1x32xf32>
    %17 = vector.extract_strided_slice %2 {offsets = [3, 0], sizes = [1, 32], strides = [1, 1]} : vector<8x32xf32> to vector<1x32xf32>
    %cst_10 = arith.constant dense<0.000000e+00> : vector<1x32xf32>
    %18 = tpu.matmul %16, %3, %cst_10 {dimension_numbers = #tpu.dot_dimension_numbers<[1], [1], [0], [0], [0, 0, 1, 0], [], []>} : vector<1x32xf32>, vector<32x32xf32>, vector<1x32xf32> -> vector<1x32xf32>
    %19 = arith.addf %17, %18 : vector<1x32xf32>
    %20 = math.tanh %19 : vector<1x32xf32>
    %21 = vector.extract_strided_slice %2 {offsets = [4, 0], sizes = [1, 32], strides = [1, 1]} : vector<8x32xf32> to vector<1x32xf32>
    %cst_11 = arith.constant dense<0.000000e+00> : vector<1x32xf32>
    %22 = tpu.matmul %20, %3, %cst_11 {dimension_numbers = #tpu.dot_dimension_numbers<[1], [1], [0], [0], [0, 0, 1, 0], [], []>} : vector<1x32xf32>, vector<32x32xf32>, vector<1x32xf32> -> vector<1x32xf32>
    %23 = arith.addf %21, %22 : vector<1x32xf32>
    %24 = math.tanh %23 : vector<1x32xf32>
    %25 = vector.extract_strided_slice %2 {offsets = [5, 0], sizes = [1, 32], strides = [1, 1]} : vector<8x32xf32> to vector<1x32xf32>
    %cst_12 = arith.constant dense<0.000000e+00> : vector<1x32xf32>
    %26 = tpu.matmul %24, %3, %cst_12 {dimension_numbers = #tpu.dot_dimension_numbers<[1], [1], [0], [0], [0, 0, 1, 0], [], []>} : vector<1x32xf32>, vector<32x32xf32>, vector<1x32xf32> -> vector<1x32xf32>
    %27 = arith.addf %25, %26 : vector<1x32xf32>
    %28 = math.tanh %27 : vector<1x32xf32>
    %29 = vector.extract_strided_slice %2 {offsets = [6, 0], sizes = [1, 32], strides = [1, 1]} : vector<8x32xf32> to vector<1x32xf32>
    %cst_13 = arith.constant dense<0.000000e+00> : vector<1x32xf32>
    %30 = tpu.matmul %28, %3, %cst_13 {dimension_numbers = #tpu.dot_dimension_numbers<[1], [1], [0], [0], [0, 0, 1, 0], [], []>} : vector<1x32xf32>, vector<32x32xf32>, vector<1x32xf32> -> vector<1x32xf32>
    %31 = arith.addf %29, %30 : vector<1x32xf32>
    %32 = math.tanh %31 : vector<1x32xf32>
    %33 = vector.extract_strided_slice %2 {offsets = [7, 0], sizes = [1, 32], strides = [1, 1]} : vector<8x32xf32> to vector<1x32xf32>
    %cst_14 = arith.constant dense<0.000000e+00> : vector<1x32xf32>
    %34 = tpu.matmul %32, %3, %cst_14 {dimension_numbers = #tpu.dot_dimension_numbers<[1], [1], [0], [0], [0, 0, 1, 0], [], []>} : vector<1x32xf32>, vector<32x32xf32>, vector<1x32xf32> -> vector<1x32xf32>
    %35 = arith.addf %33, %34 : vector<1x32xf32>
    %36 = math.tanh %35 : vector<1x32xf32>
    %37 = tpu.concatenate %8, %12, %16, %20, %24, %28, %32, %36 in 0 : vector<1x32xf32>, vector<1x32xf32>, vector<1x32xf32>, vector<1x32xf32>, vector<1x32xf32>, vector<1x32xf32>, vector<1x32xf32>, vector<1x32xf32> -> vector<8x32xf32>
    %c0_15 = arith.constant 0 : index
    %c0_16 = arith.constant 0 : index
    %38 = vector.load %arg4[%c0_15, %c0_16] : memref<8x32xf32, #tpu.memory_space<vmem>>, vector<8x32xf32>
    tpu.vector_store %arg4[%c0_15, %c0_16], %37 {strides = array<i32>} : memref<8x32xf32, #tpu.memory_space<vmem>>, vector<8x32xf32>,
    return
  }
}

</mosaic_0001>

<bundles_post_ra>
// kernel: rnn_forward.1
= control target key start
LH: loop header
LB: loop body
LE: loop exit
PB: predicated region body
PF: predicated region fallthrough
CT: control target
= control target key end

     0   :  { %vm22_vm0 = vcmask 72704   ;;  %vm63_vm1 = vcmask 261120   ;;  %vm303_vm2 = vcmask 1040384   ;;  %vm305_vm3 = vcmask 1041408   ;;  %s487_s2 = inlined_call_operand.vmem [shape: f32[32,9], index: 2, kind: input, shape index: {}]   ;;  %s488_s3 = inlined_call_operand.vmem [shape: f32[32,32], index: 3, kind: input, shape index: {}]   ;;  %s489_s0 = inlined_call_operand.vmem [shape: f32[8,9], index: 0, kind: input, shape index: {}]   ;;  %s490_s1 = inlined_call_operand.vmem [shape: f32[1,32], index: 1, kind: input, shape index: {}]   ;;  %s491_s4 = inlined_call_operand.vmem [shape: f32[8,32], index: 4, kind: output, shape index: {}]  }
   0x1   :  { %v21_v0 = vld [vmem:[%s487_s2 + $0x18] sm:$0xff]  ;;  %v20_v2 = vld [vmem:[%s487_s2 + $0x10] sm:$0xff]  ;;  %v19_v4 = vld [vmem:[%s487_s2 + $0x8] sm:$0xff]  ;;  %vm307_vm4 = vcmask 1042432   ;;  %vm309_vm5 = vcmask 1043456   ;;  %vm311_vm6 = vcmask 1044480  }
   0x2   :  { %v61_v1 = vld [vmem:[%s488_s3 + $0x18] sm:$0xff]  ;;  %322 = vmatpush.xpose.msk.msra.mxu0 %vm22_vm0, %v21_v0  ;;  %v60_v3 = vld [vmem:[%s488_s3 + $0x10] sm:$0xff]  ;;  %v59_v5 = vld [vmem:[%s488_s3 + $0x8] sm:$0xff]  ;;  %vm313_vm7 = vcmask 1045504   ;;  %vm315_vm8 = vcmask 1046528  }
   0x3   :  { %327 = vmatpush.xpose.msk.msra.mxu1 %vm63_vm1, %v61_v1  ;;  %332 = vmatpush.xpose.msk.msra.mxu2 %vm63_vm1, %v61_v1  ;;  %v18_v6 = vld [vmem:[%s487_s2] sm:$0xff] }
   0x4   :  { %337 = vmatpush.xpose.msk.msra.mxu3 %vm63_vm1, %v61_v1  ;;  %v58_v7 = vld [vmem:[%s488_s3] sm:$0xff] }
   0x5   :  { %v17_v8 = vld [vmem:[%s489_s0] sm:$0xff] }
   0x6   :  { %323 = vmatpush.xpose.msk.msra.mxu0 %vm22_vm0, %v20_v2  ;;  %v62_v9 = vld [vmem:[%s490_s1] sm:$0x1] }
   0x7   :  { %328 = vmatpush.xpose.msk.msra.mxu1 %vm63_vm1, %v60_v3  ;;  %333 = vmatpush.xpose.msk.msra.mxu2 %vm63_vm1, %v60_v3 }
   0x8   :  { %338 = vmatpush.xpose.msk.msra.mxu3 %vm63_vm1, %v60_v3 }
   0xa   :  { %324 = vmatpush.xpose.msk.msra.mxu0 %vm22_vm0, %v19_v4 }
   0xb   :  { %329 = vmatpush.xpose.msk.msra.mxu1 %vm63_vm1, %v59_v5  ;;  %334 = vmatpush.xpose.msk.msra.mxu2 %vm63_vm1, %v59_v5 }
   0xc   :  { %339 = vmatpush.xpose.msk.msra.mxu3 %vm63_vm1, %v59_v5 }
   0xe   :  { %325 = vmatpush.xpose.msk.msra.mxu0 %vm22_vm0, %v18_v6 }
   0xf   :  { %330 = vmatpush.xpose.msk.msra.mxu1 %vm63_vm1, %v58_v7  ;;  %335 = vmatpush.xpose.msk.msra.mxu2 %vm63_vm1, %v58_v7 }
  0x10   :  { %340 = vmatpush.xpose.msk.msra.mxu3 %vm63_vm1, %v58_v7 }
  0x11   :  { %326 = vmatmul.msk.f32.vlgmr.msra.gmra.mxu0 %vm22_vm0, %v17_v8 }
  0x12   :  { %342 = vmatpush.xpose.msk.msrb.mxu0 %vm63_vm1, %v61_v1  ;;  %331 = vmatmul.msk.f32.vlgmr.msra.gmra.mxu1 %vm63_vm1, %v62_v9 }
  0x13   :  { %347 = vmatpush.xpose.msk.msrb.mxu1 %vm63_vm1, %v61_v1  ;;  %352 = vmatpush.xpose.msk.msrb.mxu2 %vm63_vm1, %v61_v1 }
  0x14   :  { %357 = vmatpush.xpose.msk.msrb.mxu3 %vm63_vm1, %v61_v1 }
  0x16   :  { %343 = vmatpush.xpose.msk.msrb.mxu0 %vm63_vm1, %v60_v3 }
  0x17   :  { %348 = vmatpush.xpose.msk.msrb.mxu1 %vm63_vm1, %v60_v3  ;;  %353 = vmatpush.xpose.msk.msrb.mxu2 %vm63_vm1, %v60_v3 }
  0x18   :  { %358 = vmatpush.xpose.msk.msrb.mxu3 %vm63_vm1, %v60_v3 }
  0x1a   :  { %344 = vmatpush.xpose.msk.msrb.mxu0 %vm63_vm1, %v59_v5 }
  0x1b   :  { %349 = vmatpush.xpose.msk.msrb.mxu1 %vm63_vm1, %v59_v5  ;;  %354 = vmatpush.xpose.msk.msrb.mxu2 %vm63_vm1, %v59_v5 }
  0x1c   :  { %359 = vmatpush.xpose.msk.msrb.mxu3 %vm63_vm1, %v59_v5 }
  0x1e   :  { %345 = vmatpush.xpose.msk.msrb.mxu0 %vm63_vm1, %v58_v7 }
  0x1f   :  { %350 = vmatpush.xpose.msk.msrb.mxu1 %vm63_vm1, %v58_v7  ;;  %355 = vmatpush.xpose.msk.msrb.mxu2 %vm63_vm1, %v58_v7 }
  0x20   :  { %360 = vmatpush.xpose.msk.msrb.mxu3 %vm63_vm1, %v58_v7 }
  0x22   :  { %362 = vmatpush.xpose.msk.msra.mxu0 %vm63_vm1, %v61_v1 }
  0x26   :  { %363 = vmatpush.xpose.msk.msra.mxu0 %vm63_vm1, %v60_v3 }
  0x2a   :  { %364 = vmatpush.xpose.msk.msra.mxu0 %vm63_vm1, %v59_v5 }
  0x2e   :  { %365 = vmatpush.xpose.msk.msra.mxu0 %vm63_vm1, %v58_v7 }
  0x8e   :  { %v55_v10 = vpop.f32.mrf.mxu0 }
  0x8f   :  { %v96_v11 = vpop.f32.mrf.mxu1 }
  0x90   :  { %v99_v12 = vadd.f32 %v96_v11, %v55_v10 }
  0x92   :  { %367 = vtanh.f32 %v99_v12 }
  0x98   :  { %v368_v13 = vpop.eup %367 }
  0x99   :  { %336 = vmatmul.msk.f32.vlgmr.msra.gmra.mxu2 %vm63_vm1, %v368_v13 }
 0x11c   :  { %v121_v14 = vpop.f32.mrf.mxu2 }
 0x11d   :  { %v125_v15 = vrot.slane %v121_v14, 7 }
 0x11f   :  { %v127_v16 = vadd.f32 %v125_v15, %v55_v10 }
 0x121   :  { %369 = vtanh.f32 %v127_v16 }
 0x127   :  { %v370_v17 = vpop.eup %369 }
 0x128   :  { %v130_v18 = vrot.slane %v370_v17, 1  ;;  %v304_v23 = vsel %vm303_vm2, %v368_v13, %v370_v17 }
 0x12a   :  { %341 = vmatmul.msk.f32.vlgmr.msra.gmra.mxu3 %vm63_vm1, %v130_v18 }
 0x1ad   :  { %v150_v19 = vpop.f32.mrf.mxu3 }
 0x1ae   :  { %v154_v20 = vrot.slane %v150_v19, 6 }
 0x1b0   :  { %v156_v21 = vadd.f32 %v154_v20, %v55_v10 }
 0x1b2   :  { %371 = vtanh.f32 %v156_v21 }
 0x1b8   :  { %v372_v22 = vpop.eup %371 }
 0x1b9   :  { %v306_v24 = vsel %vm305_vm3, %v304_v23, %v372_v22  ;;  %v159_v25 = vrot.slane %v372_v22, 2 }
 0x1bb   :  { %346 = vmatmul.msk.f32.vlgmr.msrb.gmra.mxu0 %vm63_vm1, %v159_v25 }
 0x238   :  { %v179_v26 = vpop.f32.mrf.mxu0 }
 0x239   :  { %v183_v27 = vrot.slane %v179_v26, 5 }
 0x23b   :  { %v185_v28 = vadd.f32 %v183_v27, %v55_v10 }
 0x23d   :  { %373 = vtanh.f32 %v185_v28 }
 0x243   :  { %v374_v29 = vpop.eup %373 }
 0x244   :  { %v308_v30 = vsel %vm307_vm4, %v306_v24, %v374_v29  ;;  %v188_v31 = vrot.slane %v374_v29, 3 }
 0x246   :  { %351 = vmatmul.msk.f32.vlgmr.msrb.gmra.mxu1 %vm63_vm1, %v188_v31 }
 0x2c3   :  { %v208_v32 = vpop.f32.mrf.mxu1 }
 0x2c4   :  { %v212_v33 = vrot.slane %v208_v32, 4 }
 0x2c6   :  { %v214_v34 = vadd.f32 %v212_v33, %v55_v10 }
 0x2c8   :  { %375 = vtanh.f32 %v214_v34 }
 0x2ce   :  { %v376_v35 = vpop.eup %375 }
 0x2cf   :  { %v310_v36 = vsel %vm309_vm5, %v308_v30, %v376_v35  ;;  %v217_v37 = vrot.slane %v376_v35, 4 }
 0x2d1   :  { %356 = vmatmul.msk.f32.vlgmr.msrb.gmra.mxu2 %vm63_vm1, %v217_v37 }
 0x354   :  { %v237_v38 = vpop.f32.mrf.mxu2 }
 0x355   :  { %v241_v39 = vrot.slane %v237_v38, 3 }
 0x357   :  { %v243_v40 = vadd.f32 %v241_v39, %v55_v10 }
 0x359   :  { %377 = vtanh.f32 %v243_v40 }
 0x35f   :  { %v378_v41 = vpop.eup %377 }
 0x360   :  { %v312_v42 = vsel %vm311_vm6, %v310_v36, %v378_v41  ;;  %v246_v43 = vrot.slane %v378_v41, 5 }
 0x362   :  { %361 = vmatmul.msk.f32.vlgmr.msrb.gmra.mxu3 %vm63_vm1, %v246_v43 }
 0x3e5   :  { %v266_v44 = vpop.f32.mrf.mxu3 }
 0x3e6   :  { %v270_v45 = vrot.slane %v266_v44, 2 }
 0x3e8   :  { %v272_v46 = vadd.f32 %v270_v45, %v55_v10 }
 0x3ea   :  { %379 = vtanh.f32 %v272_v46 }
 0x3f0   :  { %v380_v47 = vpop.eup %379 }
 0x3f1   :  { %v275_v48 = vrot.slane %v380_v47, 6  ;;  %v314_v49 = vsel %vm313_vm7, %v312_v42, %v380_v47 }
 0x3f3   :  { %366 = vmatmul.msk.f32.vlgmr.msra.gmra.mxu0 %vm63_vm1, %v275_v48 }
 0x470   :  { %v295_v50 = vpop.f32.mrf.mxu0 }
 0x471   :  { %v299_v51 = vrot.slane %v295_v50, 1 }
 0x473   :  { %v301_v52 = vadd.f32 %v299_v51, %v55_v10 }
 0x475   :  { %381 = vtanh.f32 %v301_v52 }
 0x47b   :  { %v382_v53 = vpop.eup %381 }
 0x47c   :  { %v316_v54 = vsel %vm315_vm8, %v314_v49, %v382_v53 }
 0x47d   :  { %317 = vst.msk [vmem:[%s491_s4] sm:$0xff] %vm63_vm1, %v316_v54 }

</bundles_post_ra>
